<compile_context>
chip_gen: v6e
topology: v6e:2x2x1
jax: 0.10.0
libtpu: 0.0.40
codegen_flags: <defaults>
</compile_context>

<pallas_src>
import math
import functools

import jax
import jax.numpy as jnp
from jax import lax
from jax.experimental import pallas as pl
from jax.experimental.pallas import tpu as pltpu

_INV_SQRT2 = 1.0 / math.sqrt(2.0)


def _round_up(x: int, m: int) -> int:
    return ((x + m - 1) // m) * m


def _vmem_capacity_bytes() -> int:
    """Physical VMEM of the current chip; conservative 64 MiB (v7x) fallback."""
    try:
        cap = int(pltpu.get_tpu_info().vmem_capacity_bytes)
        if cap > 0:
            return cap
    except Exception:
        pass
    return 64 * 1024 * 1024


# ----------------------------- kernels --------------------------------------


def _expert_kernel_fused(x_ref, w_ref, b_ref, o_ref, *, precision):
    # Full-K contraction in one shot (no K grid axis, no accumulator scratch),
    # fused with bias add + exact (erf) GELU epilogue.
    y = jnp.dot(x_ref[...], w_ref[...],
                preferred_element_type=jnp.float32, precision=precision)
    y = y + b_ref[...].astype(jnp.float32)
    y = 0.5 * y * (1.0 + lax.erf(y * _INV_SQRT2))
    o_ref[...] = y.astype(o_ref.dtype)


def _expert_kernel_kloop(x_ref, w_ref, b_ref, o_ref, acc_ref, *, precision):
    # (M, N, K)-tiled path for large D_in: f32 VMEM accumulator across the
    # K grid axis (last / "arbitrary"), GELU fused at the final K step.
    k = pl.program_id(2)

    @pl.when(k == 0)
    def _init():
        acc_ref[...] = jnp.zeros_like(acc_ref)

    acc_ref[...] += jnp.dot(x_ref[...], w_ref[...],
                            preferred_element_type=jnp.float32,
                            precision=precision)

    @pl.when(k == pl.num_programs(2) - 1)
    def _finalize():
        y = acc_ref[...] + b_ref[...].astype(jnp.float32)
        y = 0.5 * y * (1.0 + lax.erf(y * _INV_SQRT2))
        o_ref[...] = y.astype(o_ref.dtype)


# ----------------------------- wrapper --------------------------------------


@functools.partial(
    jax.jit,
    static_argnames=("tm", "tn", "tk", "k_fused", "in_dtype_name",
                     "out_dtype_name", "precision", "vmem_limit"))
def _expert_layer_impl(x, weight_t, bias, *, tm, tn, tk, k_fused,
                       in_dtype_name, out_dtype_name, precision, vmem_limit):
    B, D_in = x.shape
    _, D_out = weight_t.shape
    in_dtype = jnp.dtype(in_dtype_name)
    out_dtype = jnp.dtype(out_dtype_name)

    # bf16 path: cast *before* the pallas_call so HBM traffic is actually
    # halved (casting inside the kernel would not reduce the DMA'd bytes).
    if x.dtype != in_dtype:
        x = x.astype(in_dtype)
    if weight_t.dtype != in_dtype:
        weight_t = weight_t.astype(in_dtype)
    bias2d = bias.reshape(1, D_out).astype(jnp.float32)

    Bp = _round_up(B, tm)
    Np = _round_up(D_out, tn)
    Kp = _round_up(D_in, tk)

    # Pad only when a dim is not already tile-aligned.  Zero K-padding keeps
    # the contraction exact; padded M/N rows of the output are trimmed below.
    # TODO(synk): for hot serving paths, pre-pad / pre-cast the (static) weight
    # once outside this function so it is not re-padded on every call.
    if (Bp, Kp) != (B, D_in):
        x = jnp.pad(x, ((0, Bp - B), (0, Kp - D_in)))
    if (Kp, Np) != (D_in, D_out):
        weight_t = jnp.pad(weight_t, ((0, Kp - D_in), (0, Np - D_out)))
    if Np != D_out:
        bias2d = jnp.pad(bias2d, ((0, 0), (0, Np - D_out)))

    if k_fused:
        # K collapsed: grid is (M, N).  With a single N block the weight block
        # index is constant -> the weight is DMA'd from HBM exactly once.
        grid = (Bp // tm, Np // tn)
        in_specs = [
            pl.BlockSpec((tm, tk), lambda i, j: (i, 0)),   # x tile
            pl.BlockSpec((tk, tn), lambda i, j: (0, j)),   # weight tile
            pl.BlockSpec((1, tn), lambda i, j: (0, j)),    # bias tile
        ]
        out_specs = pl.BlockSpec((tm, tn), lambda i, j: (i, j))
        scratch_shapes = []
        dim_sem = ("parallel", "parallel")
        kernel = functools.partial(_expert_kernel_fused, precision=precision)
    else:
        # Large D_in: (M, N, K) tiling with K last / "arbitrary" + f32 scratch.
        grid = (Bp // tm, Np // tn, Kp // tk)
        in_specs = [
            pl.BlockSpec((tm, tk), lambda i, j, k: (i, k)),
            pl.BlockSpec((tk, tn), lambda i, j, k: (k, j)),
            pl.BlockSpec((1, tn), lambda i, j, k: (0, j)),
        ]
        out_specs = pl.BlockSpec((tm, tn), lambda i, j, k: (i, j))
        scratch_shapes = [pltpu.VMEM((tm, tn), jnp.float32)]
        dim_sem = ("parallel", "parallel", "arbitrary")
        kernel = functools.partial(_expert_kernel_kloop, precision=precision)

    out = pl.pallas_call(
        kernel,
        out_shape=jax.ShapeDtypeStruct((Bp, Np), out_dtype),
        grid_spec=pltpu.PrefetchScalarGridSpec(
            num_scalar_prefetch=0,
            grid=grid,
            in_specs=in_specs,
            out_specs=out_specs,
            scratch_shapes=scratch_shapes,
        ),
        compiler_params=pltpu.CompilerParams(
            dimension_semantics=dim_sem,
            vmem_limit_bytes=vmem_limit,
        ),
    )(x, weight_t, bias2d)

    if (Bp, Np) != (B, D_out):
        out = out[:B, :D_out]
    return out


def expert_layer(x, weight_t, bias, *, use_bf16=False,
                 tile_m=None, tile_n=None, tile_k=None):
    """x: [B, D_in], weight_t: [D_in, D_out], bias: [D_out] -> [B, D_out]."""
    B, D_in = x.shape
    D_in_w, D_out = weight_t.shape
    assert D_in == D_in_w, "weight_t must be [D_in, D_out]"

    out_dtype = x.dtype
    in_dtype = jnp.dtype(jnp.bfloat16) if use_bf16 else jnp.dtype(x.dtype)
    in_isz = in_dtype.itemsize
    out_isz = jnp.dtype(out_dtype).itemsize

    Bp8 = _round_up(B, 8)          # f32/bf16 sublane multiple
    Np128 = _round_up(D_out, 128)  # lane-dense output (no masked vst)
    Kp128 = _round_up(D_in, 128)   # lane-dense LHS / sublane-aligned RHS

    vmem_cap = _vmem_capacity_bytes()
    budget = int(0.45 * vmem_cap)  # headroom for pipeline & internal scratch

    def needed(tm, tn, tk):
        n = (2 * tm * tk + 2 * tk * tn) * in_isz   # x, w (double-buffered)
        n += 2 * tm * tn * out_isz                 # out (double-buffered)
        n += 2 * tn * 4                            # f32 bias
        if tk < Kp128:                             # K is a grid axis
            n += tm * tn * 4                       # f32 accumulator scratch
        return n

    # Defaults per the perf review: large M tile first, lane-dense N, and
    # prefer collapsing K entirely when D_in is moderate.
    tm = min(tile_m if tile_m is not None else 512, Bp8)
    tn = min(tile_n if tile_n is not None else 512, Np128)
    if tile_k is not None:
        tk = min(tile_k, Kp128)
    else:
        tk = Kp128 if Kp128 <= 4096 else 1024

    # Shrink the largest tile dim first until the working set fits the budget
    # (keeps MXU / lane alignment: M multiples of 8, N/K multiples of 128).
    while needed(tm, tn, tk) > budget:
        if tk >= max(tm, tn) and tk > 128:
            tk = max(128, _round_up(tk // 2, 128))
        elif tm >= tn and tm > 8:
            tm = max(8, _round_up(tm // 2, 8))
        elif tn > 128:
            tn = max(128, _round_up(tn // 2, 128))
        else:
            break

    # Weight-resident upgrade: with a fused K and a single N block the weight
    # block index is constant, so W is read from HBM once regardless of B.
    if tk == Kp128 and tn < Np128 and needed(tm, Np128, tk) <= budget:
        tn = Np128

    k_fused = (tk == Kp128)

    vmem_limit = int(min(0.9 * vmem_cap,
                         max(needed(tm, tn, tk) * 5 // 4, 32 * 1024 * 1024)))

    # f32 path: request full-precision MXU passes so the result matches the
    # f32 PyTorch reference at any D_in.  bf16 path: single-pass is exact for
    # bf16 operands with the f32 accumulator.
    precision = (lax.Precision.DEFAULT if in_dtype == jnp.dtype(jnp.bfloat16)
                 else lax.Precision.HIGHEST)

    # TODO(synk): on v7x (2 TCs) a tiny grid (1x1) leaves one core idle; for
    # small-batch expert calls consider splitting N across cores.
    return _expert_layer_impl(
        x, weight_t, bias,
        tm=tm, tn=tn, tk=tk, k_fused=k_fused,
        in_dtype_name=in_dtype.name,
        out_dtype_name=jnp.dtype(out_dtype).name,
        precision=precision, vmem_limit=vmem_limit)


if __name__ == "__main__":
    # Small shapes implied by the module: a batch of tokens, input_dim -> output_dim.
    B, input_dim, output_dim = 16, 32, 64

    key = jax.random.PRNGKey(0)
    kx, kw, kb = jax.random.split(key, 3)

    # Deterministic parameter init mimicking nn.Linear: U(-1/sqrt(in), 1/sqrt(in)).
    bound = 1.0 / math.sqrt(input_dim)
    # PyTorch weight is [out, in]; store transposed [in, out] for the kernel.
    weight = jax.random.uniform(kw, (output_dim, input_dim),
                                minval=-bound, maxval=bound, dtype=jnp.float32)
    bias = jax.random.uniform(kb, (output_dim,),
                              minval=-bound, maxval=bound, dtype=jnp.float32)
    weight_t = weight.T  # [input_dim, output_dim]

    x = jax.random.normal(kx, (B, input_dim), dtype=jnp.float32)

    out = expert_layer(x, weight_t, bias)
    out = jax.block_until_ready(out)

    # Reference in plain JAX (exact erf-based GELU, matching nn.GELU()).
    ref = x @ weight_t + bias.reshape(1, output_dim)
    ref = 0.5 * ref * (1.0 + lax.erf(ref * _INV_SQRT2))
    assert out.shape == (B, output_dim)
    assert jnp.allclose(out, ref, atol=1e-5, rtol=1e-5)

    print("KERNEL_OK")
</pallas_src>

<mosaic_0001>
module attributes {stable_mosaic.version = 11 : i64} {
  func.func @_expert_kernel_fused(%arg0: i32, %arg1: i32, %arg2: memref<16x128xf32, #tpu.memory_space<vmem>>, %arg3: memref<128x128xf32, #tpu.memory_space<vmem>>, %arg4: memref<1x128xf32, #tpu.memory_space<vmem>>, %arg5: memref<16x128xf32, #tpu.memory_space<vmem>>) attributes {dimension_semantics = [#tpu.dimension_semantics<parallel>, #tpu.dimension_semantics<parallel>], iteration_bounds = array<i64: 1, 1>, scalar_prefetch = 0 : i64, scratch_operands = 0 : i64, tpu.core_type = #tpu.core_type<tc>, window_params = [{transform_indices = @transform_0, window_bounds = array<i64: 16, 128>}, {transform_indices = @transform_1, window_bounds = array<i64: 128, 128>}, {transform_indices = @transform_2, window_bounds = array<i64: 1, 128>}, {transform_indices = @transform_3, window_bounds = array<i64: 16, 128>}]} {
    %c0 = arith.constant 0 : index
    %c0_0 = arith.constant 0 : index
    %0 = vector.load %arg2[%c0, %c0_0] : memref<16x128xf32, #tpu.memory_space<vmem>>, vector<16x128xf32>
    %c0_1 = arith.constant 0 : index
    %c0_2 = arith.constant 0 : index
    %1 = vector.load %arg3[%c0_1, %c0_2] : memref<128x128xf32, #tpu.memory_space<vmem>>, vector<128x128xf32>
    %cst = arith.constant dense<0.000000e+00> : vector<16x128xf32>
    %2 = tpu.matmul %0, %1, %cst {dimension_numbers = #tpu.dot_dimension_numbers<[1], [0], [0], [1], [0, 0, 1, 1], [], []>, precision = #tpu.contract_precision<fp32>} : vector<16x128xf32>, vector<128x128xf32>, vector<16x128xf32> -> vector<16x128xf32>
    %c0_3 = arith.constant 0 : index
    %c0_4 = arith.constant 0 : index
    %3 = vector.load %arg4[%c0_3, %c0_4] : memref<1x128xf32, #tpu.memory_space<vmem>>, vector<1x128xf32>
    %4 = vector.broadcast %3 : vector<1x128xf32> to vector<16x128xf32>
    %5 = arith.addf %2, %4 : vector<16x128xf32>
    %cst_5 = arith.constant 5.000000e-01 : f32
    %6 = vector.broadcast %cst_5 : f32 to vector<16x128xf32>
    %7 = arith.mulf %6, %5 : vector<16x128xf32>
    %cst_6 = arith.constant 0.707106769 : f32
    %8 = vector.broadcast %cst_6 : f32 to vector<16x128xf32>
    %9 = arith.mulf %5, %8 : vector<16x128xf32>
    %10 = math.erf %9 : vector<16x128xf32>
    %cst_7 = arith.constant 1.000000e+00 : f32
    %11 = vector.broadcast %cst_7 : f32 to vector<16x128xf32>
    %12 = arith.addf %11, %10 : vector<16x128xf32>
    %13 = arith.mulf %7, %12 : vector<16x128xf32>
    %c0_8 = arith.constant 0 : index
    %c0_9 = arith.constant 0 : index
    %14 = vector.load %arg5[%c0_8, %c0_9] : memref<16x128xf32, #tpu.memory_space<vmem>>, vector<16x128xf32>
    tpu.vector_store %arg5[%c0_8, %c0_9], %13 {strides = array<i32>} : memref<16x128xf32, #tpu.memory_space<vmem>>, vector<16x128xf32>,
    return
  }
  func.func @transform_0(%arg0: i32, %arg1: i32) -> (i32, i32) {
    %c0_i32 = arith.constant 0 : i32
    %c0_i32_0 = arith.constant 0 : i32
    return %arg0, %c0_i32 : i32, i32
  }
  func.func @transform_1(%arg0: i32, %arg1: i32) -> (i32, i32) {
    %c0_i32 = arith.constant 0 : i32
    %c0_i32_0 = arith.constant 0 : i32
    return %c0_i32, %arg1 : i32, i32
  }
  func.func @transform_2(%arg0: i32, %arg1: i32) -> (i32, i32) {
    %c0_i32 = arith.constant 0 : i32
    %c0_i32_0 = arith.constant 0 : i32
    return %c0_i32, %arg1 : i32, i32
  }
  func.func @transform_3(%arg0: i32, %arg1: i32) -> (i32, i32) {
    %c0_i32 = arith.constant 0 : i32
    return %arg0, %arg1 : i32, i32
  }
}

</mosaic_0001>

<bundles_post_ra>
// kernel: _expert_layer_impl.1
= control target key start
LH: loop header
LB: loop body
LE: loop exit
PB: predicated region body
PF: predicated region fallthrough
CT: control target
= control target key end

     0   :  { %s1533_s0 = inlined_call_operand.vmem [shape: f32[16,128], index: 0, kind: input, shape index: {}]   ;;  %s1534_s1 = inlined_call_operand.vmem [shape: f32[128,128], index: 1, kind: input, shape index: {}]   ;;  %s1535_s2 = inlined_call_operand.vmem [shape: f32[1,128], index: 2, kind: input, shape index: {}]   ;;  %s1536_s3 = inlined_call_operand.hbm [shape: f32[16,128], index: 3, kind: output, shape index: {}]  }
   0x1   :  { %v32_v0 = vld [vmem:[%s1534_s1 + $0x78] sm:$0xff]  ;;  %v31_v1 = vld [vmem:[%s1534_s1 + $0x70] sm:$0xff]  ;;  %v30_v2 = vld [vmem:[%s1534_s1 + $0x68] sm:$0xff] }
   0x2   :  { %v1132_v3 = vand.u32 4294901760, %v32_v0  ;;  %v1134_v4 = vand.u32 4294901760, %v31_v1  ;;  %v1136_v5 = vand.u32 4294901760, %v30_v2  ;;  %v29_v6 = vld [vmem:[%s1534_s1 + $0x60] sm:$0xff]  ;;  %v28_v7 = vld [vmem:[%s1534_s1 + $0x58] sm:$0xff]  ;;  %v27_v8 = vld [vmem:[%s1534_s1 + $0x50] sm:$0xff] }
   0x3   :  { %v1147_v9 = vand.u32 4294901760, %v29_v6  ;;  %v1149_v10 = vand.u32 4294901760, %v28_v7  ;;  %v1151_v11 = vand.u32 4294901760, %v27_v8  ;;  %v26_v12 = vld [vmem:[%s1534_s1 + $0x48] sm:$0xff]  ;;  %v25_v13 = vld [vmem:[%s1534_s1 + $0x40] sm:$0xff]  ;;  %v24_v18 = vld [vmem:[%s1534_s1 + $0x38] sm:$0xff] }
   0x4   :  { %861 = vmatprep.subr.mxu0 %v1132_v3  ;;  %v1161_v14 = vsub.f32 %v32_v0, %v1132_v3  ;;  %v1164_v15 = vsub.f32 %v31_v1, %v1134_v4  ;;  %v1166_v16 = vand.u32 4294901760, %v26_v12  ;;  %v1169_v17 = vsub.f32 %v30_v2, %v1136_v5  ;;  %v23_v25 = vld [vmem:[%s1534_s1 + $0x30] sm:$0xff] }
   0x5   :  { %862 = vmatpush3.msra.mxu0 %v1132_v3  ;;  %v1176_v19 = vsub.f32 %v29_v6, %v1147_v9  ;;  %v1179_v20 = vsub.f32 %v28_v7, %v1149_v10  ;;  %v1191_v24 = vand.u32 4294901760, %v25_v13  ;;  %v1200_v27 = vand.u32 4294901760, %v24_v18 }
   0x6   :  { %863 = vmatprep.subr.mxu0 %v1134_v4  ;;  %v1183_v21 = vand.u32 4294901760, %v1161_v14  ;;  %v1186_v22 = vand.u32 4294901760, %v1164_v15  ;;  %v1189_v23 = vand.u32 4294901760, %v1169_v17  ;;  %v1206_v29 = vsub.f32 %v27_v8, %v1151_v11 }
   0x7   :  { %864 = vmatpush3.msra.mxu0 %v1134_v4  ;;  %v1198_v26 = vand.u32 4294901760, %v1176_v19  ;;  %v1203_v28 = vand.u32 4294901760, %v1179_v20 }
   0x8   :  { %8 = vsyncpa [#allocation3], 0  ;;  %865 = vmatprep.subr.mxu0 %v1136_v5  ;;  %v145_v30 = vsub.f32 %v1161_v14, %v1183_v21  ;;  %v152_v31 = vsub.f32 %v1164_v15, %v1186_v22  ;;  %v159_v32 = vsub.f32 %v1169_v17, %v1189_v23  ;;  %v1216_v33 = vsub.f32 %v26_v12, %v1166_v16  ;;  %v22_v35 = vld [vmem:[%s1534_s1 + $0x28] sm:$0xff]  ;;  %v21_v40 = vld [vmem:[%s1534_s1 + $0x20] sm:$0xff] }
   0x9   :  { %866 = vmatpush3.msra.mxu0 %v1136_v5  ;;  %v1219_v34 = vand.u32 4294901760, %v23_v25  ;;  %v166_v38 = vsub.f32 %v1176_v19, %v1198_v26  ;;  %v1228_v39 = vand.u32 4294901760, %v1206_v29  ;;  %v173_v41 = vsub.f32 %v1179_v20, %v1203_v28  ;;  %v20_v48 = vld [vmem:[%s1534_s1 + $0x18] sm:$0xff]  ;;  %v15_v49 = vld [vmem:[%s1533_s0] sm:$0xff]  ;;  %v16_v54 = vld [vmem:[%s1533_s0 + $0x8] sm:$0xff] }
   0xa   :  { %867 = vmatprep.subr.mxu0 %v1147_v9  ;;  %v146_v36 = vand.u32 4294901760, %v145_v30  ;;  %v153_v37 = vand.u32 4294901760, %v152_v31  ;;  %v1237_v42 = vand.u32 4294901760, %v1216_v33  ;;  %v1240_v43 = vsub.f32 %v25_v13, %v1191_v24  ;;  %v19_v59 = vld [vmem:[%s1534_s1 + $0x10] sm:$0xff]  ;;  %v18_v2 = vld [vmem:[%s1534_s1 + $0x8] sm:$0xff] }
   0xb   :  { %868 = vmatpush3.msra.mxu0 %v1147_v9  ;;  %v160_v44 = vand.u32 4294901760, %v159_v32  ;;  %v1243_v45 = vand.u32 4294901760, %v22_v35  ;;  %v1246_v46 = vsub.f32 %v24_v18, %v1200_v27  ;;  %v1249_v47 = vand.u32 4294901760, %v21_v40  ;;  %v17_v18 = vld [vmem:[%s1534_s1] sm:$0xff] }
   0xc   :  { %869 = vmatprep.subr.mxu0 %v1149_v10  ;;  %896 = vmatprep.subr.mxu1 %v146_v36  ;;  %v167_v50 = vand.u32 4294901760, %v166_v38  ;;  %v180_v51 = vsub.f32 %v1206_v29, %v1228_v39  ;;  %v1261_v52 = vand.u32 4294901760, %v1240_v43  ;;  %v1264_v53 = vsub.f32 %v23_v25, %v1219_v34 }
   0xd   :  { %870 = vmatpush3.msra.mxu0 %v1149_v10  ;;  %897 = vmatpush3.msra.mxu1 %v146_v36  ;;  %v174_v55 = vand.u32 4294901760, %v173_v41  ;;  %v187_v56 = vsub.f32 %v1216_v33, %v1237_v42  ;;  %v1273_v57 = vand.u32 4294901760, %v20_v48  ;;  %v1276_v58 = vand.u32 4294901760, %v1246_v46 }
   0xe   :  { %871 = vmatprep.subr.mxu0 %v1151_v11  ;;  %898 = vmatprep.subr.mxu1 %v153_v37  ;;  %v1282_v60 = vsub.f32 %v22_v35, %v1243_v45  ;;  %v1284_v61 = vand.u32 4294901760, %v15_v49  ;;  %v1287_v62 = vand.u32 4294901760, %v16_v54  ;;  %v181_v63 = vand.u32 4294901760, %v180_v51 }
   0xf   :  { %872 = vmatpush3.msra.mxu0 %v1151_v11  ;;  %899 = vmatpush3.msra.mxu1 %v153_v37  ;;  %v194_v0 = vsub.f32 %v1240_v43, %v1261_v52  ;;  %v1293_v1 = vand.u32 4294901760, %v1264_v53  ;;  %v1299_v6 = vsub.f32 %v21_v40, %v1249_v47  ;;  %v188_v7 = vand.u32 4294901760, %v187_v56 }
  0x10   :  { %873 = vmatprep.subr.mxu0 %v1166_v16  ;;  %900 = vmatprep.subr.mxu1 %v160_v44  ;;  %v1302_v8 = vand.u32 4294901760, %v19_v59  ;;  %v201_v12 = vsub.f32 %v1246_v46, %v1276_v58  ;;  %v1308_v13 = vand.u32 4294901760, %v1282_v60  ;;  %v1314_v25 = vsub.f32 %v15_v49, %v1284_v61 }
  0x11   :  { %874 = vmatpush3.msra.mxu0 %v1166_v16  ;;  %901 = vmatpush3.msra.mxu1 %v160_v44  ;;  %v1317_v30 = vsub.f32 %v20_v48, %v1273_v57  ;;  %v1320_v31 = vand.u32 4294901760, %v18_v2  ;;  %v1323_v32 = vsub.f32 %v16_v54, %v1287_v62  ;;  %v195_v35 = vand.u32 4294901760, %v194_v0 }
  0x12   :  { %875 = vmatprep.subr.mxu0 %v1191_v24  ;;  %902 = vmatprep.subr.mxu1 %v167_v50  ;;  %v208_v36 = vsub.f32 %v1264_v53, %v1293_v1  ;;  %v1329_v37 = vand.u32 4294901760, %v1299_v6  ;;  %v1332_v38 = vand.u32 4294901760, %v17_v18  ;;  %v1335_v40 = vsub.f32 %v19_v59, %v1302_v8 }
  0x13   :  { %876 = vmatpush3.msra.mxu0 %v1191_v24  ;;  %903 = vmatpush3.msra.mxu1 %v167_v50  ;;  %v202_v41 = vand.u32 4294901760, %v201_v12  ;;  %v215_v44 = vsub.f32 %v1282_v60, %v1308_v13  ;;  %v1538_v48 = vand.u32 4294901760, %v1314_v25  ;;  %v1342_v49 = vand.u32 4294901760, %v1317_v30 }
  0x14   :  { %877 = vmatprep.subr.mxu0 %v1200_v27  ;;  %904 = vmatprep.subr.mxu1 %v174_v55  ;;  %v1537_v50 = vand.u32 4294901760, %v1323_v32  ;;  %v1347_v51 = vsub.f32 %v18_v2, %v1320_v31  ;;  %v209_v54 = vand.u32 4294901760, %v208_v36  ;;  %v1354_v56 = vand.u32 4294901760, %v1335_v40 }
  0x15   :  { %878 = vmatpush3.msra.mxu0 %v1200_v27  ;;  %905 = vmatpush3.msra.mxu1 %v174_v55  ;;  %v222_v55 = vsub.f32 %v1299_v6, %v1329_v37  ;;  %v1357_v59 = vsub.f32 %v17_v18, %v1332_v38  ;;  %v124_v0 = vsub.f32 %v1314_v25, %v1538_v48 }
  0x16   :  { %879 = vmatprep.subr.mxu0 %v1219_v34  ;;  %906 = vmatprep.subr.mxu1 %v181_v63  ;;  %v229_v2 = vsub.f32 %v1317_v30, %v1342_v49  ;;  %v1370_v12 = vand.u32 4294901760, %v1347_v51 }
  0x17   :  { %880 = vmatpush3.msra.mxu0 %v1219_v34  ;;  %907 = vmatpush3.msra.mxu1 %v181_v63  ;;  %v216_v63 = vand.u32 4294901760, %v215_v44  ;;  %v223_v18 = vand.u32 4294901760, %v222_v55  ;;  %v1377_v36 = vand.u32 4294901760, %v1357_v59 }
  0x18   :  { %881 = vmatprep.subr.mxu0 %v1243_v45  ;;  %908 = vmatprep.subr.mxu1 %v188_v7  ;;  %v230_v44 = vand.u32 4294901760, %v229_v2  ;;  %v243_v55 = vsub.f32 %v1347_v51, %v1370_v12 }
  0x19   :  { %882 = vmatpush3.msra.mxu0 %v1243_v45  ;;  %909 = vmatpush3.msra.mxu1 %v188_v7  ;;  %v134_v7 = vsub.f32 %v1323_v32, %v1537_v50  ;;  %v250_v48 = vsub.f32 %v1357_v59, %v1377_v36 }
  0x1a   :  { %883 = vmatprep.subr.mxu0 %v1249_v47  ;;  %910 = vmatprep.subr.mxu1 %v195_v35 }
  0x1b   :  { %884 = vmatpush3.msra.mxu0 %v1249_v47  ;;  %911 = vmatpush3.msra.mxu1 %v195_v35  ;;  %v236_v35 = vsub.f32 %v1335_v40, %v1354_v56  ;;  %v135_v50 = vand.u32 4294901760, %v134_v7 }
  0x1c   :  { %885 = vmatprep.subr.mxu0 %v1273_v57  ;;  %912 = vmatprep.subr.mxu1 %v202_v41 }
  0x1d   :  { %886 = vmatpush3.msra.mxu0 %v1273_v57  ;;  %913 = vmatpush3.msra.mxu1 %v202_v41  ;;  %v125_v41 = vand.u32 4294901760, %v124_v0  ;;  %v251_v0 = vand.u32 4294901760, %v250_v48 }
  0x1e   :  { %887 = vmatprep.subr.mxu0 %v1302_v8  ;;  %914 = vmatprep.subr.mxu1 %v209_v54 }
  0x1f   :  { %888 = vmatpush3.msra.mxu0 %v1302_v8  ;;  %915 = vmatpush3.msra.mxu1 %v209_v54  ;;  %v237_v54 = vand.u32 4294901760, %v236_v35 }
  0x20   :  { %889 = vmatprep.subr.mxu0 %v1320_v31  ;;  %916 = vmatprep.subr.mxu1 %v216_v63 }
  0x21   :  { %890 = vmatpush3.msra.mxu0 %v1320_v31  ;;  %917 = vmatpush3.msra.mxu1 %v216_v63  ;;  %v244_v63 = vand.u32 4294901760, %v243_v55 }
  0x22   :  { %891 = vmatprep.subr.mxu0 %v1332_v38  ;;  %918 = vmatprep.subr.mxu1 %v223_v18 }
  0x23   :  { %892 = vmatpush3.msra.mxu0 %v1332_v38  ;;  %919 = vmatpush3.msra.mxu1 %v223_v18 }
  0x24   :  { %893 = vmatprep.mubr.f32.mxu0 %v125_v41  ;;  %920 = vmatprep.subr.mxu1 %v230_v44 }
  0x25   :  { %931 = vmatprep.subr.mxu0 %v1161_v14  ;;  %894 = vmatmul.mubr.f32.vlgmr.msra.gmra.mxu0 %v135_v50 }
  0x26   :  { %921 = vmatpush3.msra.mxu1 %v230_v44  ;;  %932 = vmatpush3.msra.mxu0 %v1161_v14  ;;  %v1539_v14 = vand.u32 4294901760, %v1314_v25 }
  0x27   :  { %922 = vmatprep.subr.mxu1 %v237_v54  ;;  %933 = vmatprep.subr.mxu0 %v1164_v15 }
  0x28   :  { %923 = vmatpush3.msra.mxu1 %v237_v54  ;;  %934 = vmatpush3.msra.mxu0 %v1164_v15  ;;  %v1540_v15 = vand.u32 4294901760, %v1323_v32 }
  0x29   :  { %924 = vmatprep.subr.mxu1 %v244_v63  ;;  %935 = vmatprep.subr.mxu0 %v1169_v17 }
  0x2a   :  { %925 = vmatpush3.msra.mxu1 %v244_v63  ;;  %936 = vmatpush3.msra.mxu0 %v1169_v17 }
  0x2b   :  { %926 = vmatprep.subr.mxu1 %v251_v0  ;;  %937 = vmatprep.subr.mxu0 %v1176_v19 }
  0x2c   :  { %927 = vmatpush3.msra.mxu1 %v251_v0  ;;  %928 = vmatprep.mubr.f32.mxu1 %v1284_v61 }
  0x2d   :  { %938 = vmatpush3.msra.mxu0 %v1176_v19  ;;  %929 = vmatmul.mubr.f32.vlgmr.msra.gmra.mxu1 %v1287_v62 }
  0x2e   :  { %939 = vmatprep.subr.mxu0 %v1179_v20  ;;  %966 = vmatprep.subr.mxu1 %v1132_v3 }
  0x2f   :  { %940 = vmatpush3.msra.mxu0 %v1179_v20  ;;  %967 = vmatpush3.msra.mxu1 %v1132_v3 }
  0x30   :  { %941 = vmatprep.subr.mxu0 %v1206_v29  ;;  %968 = vmatprep.subr.mxu1 %v1134_v4 }
  0x31   :  { %942 = vmatpush3.msra.mxu0 %v1206_v29  ;;  %969 = vmatpush3.msra.mxu1 %v1134_v4 }
  0x32   :  { %943 = vmatprep.subr.mxu0 %v1216_v33  ;;  %970 = vmatprep.subr.mxu1 %v1136_v5 }
  0x33   :  { %944 = vmatpush3.msra.mxu0 %v1216_v33  ;;  %971 = vmatpush3.msra.mxu1 %v1136_v5 }
  0x34   :  { %945 = vmatprep.subr.mxu0 %v1240_v43  ;;  %972 = vmatprep.subr.mxu1 %v1147_v9 }
  0x35   :  { %946 = vmatpush3.msra.mxu0 %v1240_v43  ;;  %973 = vmatpush3.msra.mxu1 %v1147_v9 }
  0x36   :  { %947 = vmatprep.subr.mxu0 %v1246_v46  ;;  %974 = vmatprep.subr.mxu1 %v1149_v10 }
  0x37   :  { %948 = vmatpush3.msra.mxu0 %v1246_v46  ;;  %975 = vmatpush3.msra.mxu1 %v1149_v10 }
  0x38   :  { %949 = vmatprep.subr.mxu0 %v1264_v53  ;;  %976 = vmatprep.subr.mxu1 %v1151_v11 }
  0x39   :  { %950 = vmatpush3.msra.mxu0 %v1264_v53  ;;  %977 = vmatpush3.msra.mxu1 %v1151_v11 }
  0x3a   :  { %951 = vmatprep.subr.mxu0 %v1282_v60  ;;  %978 = vmatprep.subr.mxu1 %v1166_v16 }
  0x3b   :  { %952 = vmatpush3.msra.mxu0 %v1282_v60  ;;  %979 = vmatpush3.msra.mxu1 %v1166_v16 }
  0x3c   :  { %953 = vmatprep.subr.mxu0 %v1299_v6  ;;  %980 = vmatprep.subr.mxu1 %v1191_v24 }
  0x3d   :  { %954 = vmatpush3.msra.mxu0 %v1299_v6  ;;  %981 = vmatpush3.msra.mxu1 %v1191_v24 }
  0x3e   :  { %955 = vmatprep.subr.mxu0 %v1317_v30  ;;  %982 = vmatprep.subr.mxu1 %v1200_v27 }
  0x3f   :  { %956 = vmatpush3.msra.mxu0 %v1317_v30  ;;  %983 = vmatpush3.msra.mxu1 %v1200_v27 }
  0x40   :  { %957 = vmatprep.subr.mxu0 %v1335_v40  ;;  %984 = vmatprep.subr.mxu1 %v1219_v34 }
  0x41   :  { %958 = vmatpush3.msra.mxu0 %v1335_v40  ;;  %985 = vmatpush3.msra.mxu1 %v1219_v34 }
  0x42   :  { %959 = vmatprep.subr.mxu0 %v1347_v51  ;;  %986 = vmatprep.subr.mxu1 %v1243_v45 }
  0x43   :  { %960 = vmatpush3.msra.mxu0 %v1347_v51  ;;  %987 = vmatpush3.msra.mxu1 %v1243_v45 }
  0x44   :  { %961 = vmatprep.subr.mxu0 %v1357_v59  ;;  %988 = vmatprep.subr.mxu1 %v1249_v47 }
  0x45   :  { %962 = vmatpush3.msra.mxu0 %v1357_v59  ;;  %963 = vmatprep.mubr.f32.mxu0 %v1314_v25 }
  0x46   :  { %989 = vmatpush3.msra.mxu1 %v1249_v47  ;;  %964 = vmatmul.mubr.f32.vlgmr.msra.gmra.mxu0 %v1323_v32 }
  0x47   :  { %990 = vmatprep.subr.mxu1 %v1273_v57  ;;  %1001 = vmatprep.subr.mxu0 %v1183_v21 }
  0x48   :  { %991 = vmatpush3.msra.mxu1 %v1273_v57  ;;  %1002 = vmatpush3.msra.mxu0 %v1183_v21 }
  0x49   :  { %992 = vmatprep.subr.mxu1 %v1302_v8  ;;  %1003 = vmatprep.subr.mxu0 %v1186_v22 }
  0x4a   :  { %993 = vmatpush3.msra.mxu1 %v1302_v8  ;;  %1004 = vmatpush3.msra.mxu0 %v1186_v22 }
  0x4b   :  { %994 = vmatprep.subr.mxu1 %v1320_v31  ;;  %1005 = vmatprep.subr.mxu0 %v1189_v23 }
  0x4c   :  { %995 = vmatpush3.msra.mxu1 %v1320_v31  ;;  %1006 = vmatpush3.msra.mxu0 %v1189_v23 }
  0x4d   :  { %996 = vmatprep.subr.mxu1 %v1332_v38  ;;  %1007 = vmatprep.subr.mxu0 %v1198_v26 }
  0x4e   :  { %997 = vmatpush3.msra.mxu1 %v1332_v38  ;;  %998 = vmatprep.mubr.f32.mxu1 %v1539_v14 }
  0x4f   :  { %1008 = vmatpush3.msra.mxu0 %v1198_v26  ;;  %999 = vmatmul.mubr.f32.vlgmr.msra.gmra.mxu1 %v1540_v15 }
  0x50   :  { %1009 = vmatprep.subr.mxu0 %v1203_v28  ;;  %1036 = vmatprep.subr.mxu1 %v1132_v3 }
  0x51   :  { %1010 = vmatpush3.msra.mxu0 %v1203_v28  ;;  %1037 = vmatpush3.msra.mxu1 %v1132_v3 }
  0x52   :  { %1011 = vmatprep.subr.mxu0 %v1228_v39  ;;  %1038 = vmatprep.subr.mxu1 %v1134_v4 }
  0x53   :  { %1012 = vmatpush3.msra.mxu0 %v1228_v39  ;;  %1039 = vmatpush3.msra.mxu1 %v1134_v4  ;;  %v752_v4 = vld [vmem:[%s1535_s2] ss:$0 sm:$0xff]  ;;  %s1100_s2 = smov [#allocation2]  }
  0x54   :  { %1013 = vmatprep.subr.mxu0 %v1237_v42  ;;  %1040 = vmatprep.subr.mxu1 %v1136_v5  ;;  %s741_s21 = sshll.u32 %s1100_s2, 4  ;;  %s742_s21 = int_to_ptr.vmem [resolvable:$true] %s741_s21 }
  0x55   :  { %1014 = vmatpush3.msra.mxu0 %v1237_v42  ;;  %1041 = vmatpush3.msra.mxu1 %v1136_v5  ;;  %s1078_s22 = scalar_lea.vmem %s742_s21, 256  ;;  %p1083_p1 = scmp.lt.s32.totalorder %s742_s21, %s742_s21 }
  0x56   :  { %1015 = vmatprep.subr.mxu0 %v1261_v52  ;;  %1042 = vmatprep.subr.mxu1 %v1147_v9  ;;  %p1079_p0 = scmp.ne.s32.totalorder %s742_s21, %s1078_s22  ;;  %p1084_p2 = scmp.lt.s32.totalorder %s1078_s22, %s1078_s22 }
  0x57   :  { %1016 = vmatpush3.msra.mxu0 %v1261_v52  ;;  %1043 = vmatpush3.msra.mxu1 %v1147_v9 }
  0x58   :  { %1017 = vmatprep.subr.mxu0 %v1276_v58  ;;  %1044 = vmatprep.subr.mxu1 %v1149_v10  ;;  %p1085_p3 = por %p1084_p2, %p1083_p1 }
  0x59   :  { %1018 = vmatpush3.msra.mxu0 %v1276_v58  ;;  %1045 = vmatpush3.msra.mxu1 %v1149_v10 }
  0x5a   :  { %1019 = vmatprep.subr.mxu0 %v1293_v1  ;;  %1046 = vmatprep.subr.mxu1 %v1151_v11  ;;  %p1086_p4 = pnand %p1085_p3, %p1079_p0 }
  0x5b   :  { %1020 = vmatpush3.msra.mxu0 %v1293_v1  ;;  %1047 = vmatpush3.msra.mxu1 %v1151_v11 }
  0x5c   :  { %1021 = vmatprep.subr.mxu0 %v1308_v13  ;;  %1048 = vmatprep.subr.mxu1 %v1166_v16 }
  0x5d   :  { %1022 = vmatpush3.msra.mxu0 %v1308_v13  ;;  %1049 = vmatpush3.msra.mxu1 %v1166_v16 }
  0x5e   :  { %1023 = vmatprep.subr.mxu0 %v1329_v37  ;;  %1050 = vmatprep.subr.mxu1 %v1191_v24 }
  0x5f   :  { %1024 = vmatpush3.msra.mxu0 %v1329_v37  ;;  %1051 = vmatpush3.msra.mxu1 %v1191_v24 }
  0x60   :  { %1025 = vmatprep.subr.mxu0 %v1342_v49  ;;  %1052 = vmatprep.subr.mxu1 %v1200_v27 }
  0x61   :  { %1026 = vmatpush3.msra.mxu0 %v1342_v49  ;;  %1053 = vmatpush3.msra.mxu1 %v1200_v27 }
  0x62   :  { %1027 = vmatprep.subr.mxu0 %v1354_v56  ;;  %1054 = vmatprep.subr.mxu1 %v1219_v34 }
  0x63   :  { %1028 = vmatpush3.msra.mxu0 %v1354_v56  ;;  %1055 = vmatpush3.msra.mxu1 %v1219_v34 }
  0x64   :  { %1029 = vmatprep.subr.mxu0 %v1370_v12  ;;  %1056 = vmatprep.subr.mxu1 %v1243_v45 }
  0x65   :  { %1030 = vmatpush3.msra.mxu0 %v1370_v12  ;;  %1057 = vmatpush3.msra.mxu1 %v1243_v45 }
  0x66   :  { %1031 = vmatprep.subr.mxu0 %v1377_v36  ;;  %1058 = vmatprep.subr.mxu1 %v1249_v47 }
  0x67   :  { %1032 = vmatpush3.msra.mxu0 %v1377_v36  ;;  %1033 = vmatprep.mubr.f32.mxu0 %v1284_v61 }
  0x68   :  { %1059 = vmatpush3.msra.mxu1 %v1249_v47  ;;  %1034 = vmatmul.mubr.f32.vlgmr.msra.gmra.mxu0 %v1287_v62 }
  0x69   :  { %1060 = vmatprep.subr.mxu1 %v1273_v57  ;;  %1068 = vmatprep.mubr.f32.mxu1 %v1284_v61 }
  0x6a   :  { %1061 = vmatpush3.msra.mxu1 %v1273_v57 }
  0x6b   :  { %1062 = vmatprep.subr.mxu1 %v1302_v8 }
  0x6c   :  { %1063 = vmatpush3.msra.mxu1 %v1302_v8 }
  0x6d   :  { %1064 = vmatprep.subr.mxu1 %v1320_v31 }
  0x6e   :  { %1065 = vmatpush3.msra.mxu1 %v1320_v31 }
  0x6f   :  { %1066 = vmatprep.subr.mxu1 %v1332_v38 }
  0x70   :  { %1067 = vmatpush3.msra.mxu1 %v1332_v38 }
  0x71   :  { %1069 = vmatmul.mubr.f32.vlgmr.msra.gmra.mxu1 %v1287_v62 }
  0xe5   :  { %v895_v3 = vpop.f32.mrf.mxu0 }
  0xe6   :  { %v138_v11 = vadd.f32 %v895_v3, %v752_v4 }
  0xe7   :  { %v127_v5 = vpop.f32.mrf.mxu0 }
  0xe8   :  { %v128_v17 = vadd.f32 %v752_v4, %v127_v5 }
  0xed   :  { %v930_v9 = vpop.f32.mrf.mxu1 }
  0xee   :  { %v295_v21 = vadd.f32 %v930_v9, %v138_v11 }
  0xef   :  { %v288_v16 = vpop.f32.mrf.mxu1 }
  0xf0   :  { %v289_v23 = vadd.f32 %v288_v16, %v128_v17 }
 0x106   :  { %v965_v10 = vpop.f32.mrf.mxu0 }
 0x107   :  { %v406_v24 = vadd.f32 %v965_v10, %v295_v21 }
 0x108   :  { %v398_v19 = vpop.f32.mrf.mxu0 }
 0x109   :  { %v399_v27 = vadd.f32 %v398_v19, %v289_v23 }
 0x10f   :  { %v1000_v20 = vpop.f32.mrf.mxu1 }
 0x110   :  { %v503_v28 = vadd.f32 %v1000_v20, %v406_v24 }
 0x111   :  { %v494_v26 = vpop.f32.mrf.mxu1 }
 0x112   :  { %v495_v33 = vadd.f32 %v494_v26, %v399_v27 }
 0x128   :  { %v1035_v22 = vpop.f32.mrf.mxu0 }
 0x129   :  { %v628_v34 = vadd.f32 %v1035_v22, %v503_v28 }
 0x12a   :  { %v621_v29 = vpop.f32.mrf.mxu0 }
 0x12b   :  { %v622_v42 = vadd.f32 %v621_v29, %v495_v33 }
 0x131   :  { %v1070_v39 = vpop.f32.mrf.mxu1 }
 0x132   :  { %v721_v43 = vadd.f32 %v1070_v39, %v628_v34 }
 0x133   :  { %v714_v45 = vpop.f32.mrf.mxu1 }
 0x134   :  { %v727_v46 = vmul.f32 0.70710677, %v721_v43  ;;  %v715_v47 = vadd.f32 %v714_v45, %v622_v42  ;;  %v725_v57 = vmul.f32 0.5, %v721_v43 }
 0x136   :  { %1074 = verf.f32 %v727_v46  ;;  %v726_v52 = vmul.f32 0.70710677, %v715_v47  ;;  %v724_v62 = vmul.f32 0.5, %v715_v47 }
 0x138   :  { %1076 = verf.f32 %v726_v52 }
 0x143   :  { %v1075_v53 = vpop.eup %1074 }
 0x144   :  { %v731_v58 = vadd.f32 1.0, %v1075_v53 }
 0x145   :  { %v1077_v60 = vpop.eup %1076 }
 0x146   :  { %v733_v61 = vmul.f32 %v731_v58, %v725_v57  ;;  %v730_v1 = vadd.f32 1.0, %v1077_v60 }
 0x148   :  { %735 = vst [vmem:[#allocation2 + $0x8] sm:$0xff] %v733_v61  ;;  %v732_v6 = vmul.f32 %v730_v1, %v724_v62 }
 0x14a   :  { %734 = vst [vmem:[#allocation2] sm:$0xff] %v732_v6 }
 0x14b   :  { %1089 = shalt.err (!%p1086_p4)
}
 0x14c   :  { %s1101_s23 = smov 128   ;;  %s1102_s24 = smov 8  }
 0x14d   :  { %747 = dma.vmem_to_hbm [thread:$0]  %s742_s21, 256, %s1536_s3, [#allocation3], %s1101_s23, %s1101_s23, %s1102_s24  }
 0x14e   :  { %1098 = dma.done.wait [#allocation3], 256  }
 0x14f   :  { %1099 = vsyncadd [#allocation3], 4294967040 }
 0x150   :  { %751 = vsyncpa [#allocation3], 1 }

</bundles_post_ra>
